<compile_context>
chip_gen: v6e
topology: v6e:2x2x1
jax: 0.10.0
libtpu: 0.0.40
codegen_flags: <defaults>
</compile_context>

<pallas_src>
import functools

import jax
import jax.numpy as jnp
from jax.experimental import pallas as pl
from jax.experimental.pallas import tpu as pltpu

_LANE = 128
_ROW_ALIGN = 32  # sublane multiple safe for f32 (8), bf16 (16) and int8/fp8 (32)


def _sigmoid_kernel(x_ref, o_ref, *, compute_dtype):
    x = x_ref[...].astype(compute_dtype)
    half = jnp.asarray(0.5, compute_dtype)
    # Exact sigmoid: 0.5 * tanh(0.5 * x) + 0.5  (1 EUP op + cheap VPU mul/add).
    o_ref[...] = (half * jnp.tanh(half * x) + half).astype(o_ref.dtype)


def _tpu_config():
    """Returns (target_block_bytes, vmem_limit_bytes, multi_core, native_bf16)."""
    kind = ""
    try:
        kind = jax.devices()[0].device_kind.lower()
    except Exception:  # pragma: no cover - defensive; fall through to defaults
        pass
    if ("v5 lite" in kind) or ("v5e" in kind) or ("v5lite" in kind):
        # v5e: 1 TC, 128 MiB VMEM, ~0.8 TB/s HBM -> 3 MiB blocks already near roofline.
        return 3 * 1024 * 1024, 32 * 1024 * 1024, False, False
    if "v6" in kind:
        # v6e: 1 TC, 128 MiB VMEM -> big blocks, raise scoped VMEM, native bf16.
        return 8 * 1024 * 1024, 64 * 1024 * 1024, False, True
    if ("v7" in kind) or ("7x" in kind) or ("tpu7" in kind):
        # v7x: 2 TC/chip but only 64 MiB VMEM per TC -> big blocks, capped residency.
        return 8 * 1024 * 1024, 48 * 1024 * 1024, True, True
    # Unknown generation: conservative settings that fit every scoped-VMEM default.
    return 2 * 1024 * 1024, None, False, False


def _sigmoid_2d(x2, compute_dtype, target_block_bytes, vmem_limit_bytes, multi_core):
    rows = x2.shape[0]
    dtype = x2.dtype
    itemsize = jnp.dtype(dtype).itemsize
    bytes_per_row = _LANE * itemsize

    # Largest lane-dense tile that fits the per-generation block budget.
    tile_rows = min(max(_ROW_ALIGN, target_block_bytes // bytes_per_row), rows)
    if tile_rows < rows:
        tile_rows = max(_ROW_ALIGN, (tile_rows // _ROW_ALIGN) * _ROW_ALIGN)

    if multi_core and rows > _ROW_ALIGN:
        # v7x only: make sure both TensorCores get work and step count is ~even.
        n_steps = max(2, pl.cdiv(rows, tile_rows))
        if n_steps % 2:
            n_steps += 1
        tile_rows = max(_ROW_ALIGN, pl.cdiv(pl.cdiv(rows, n_steps), _ROW_ALIGN) * _ROW_ALIGN)
        dim_sem = (pltpu.CORE_PARALLEL,)
    else:
        dim_sem = ("arbitrary",)

    cp_kwargs = dict(dimension_semantics=dim_sem)
    if vmem_limit_bytes is not None:
        cp_kwargs["vmem_limit_bytes"] = int(vmem_limit_bytes)

    total = rows * _LANE
    cost = pl.CostEstimate(
        flops=3 * total,
        transcendentals=total,
        bytes_accessed=2 * total * itemsize,
    )

    return pl.pallas_call(
        functools.partial(_sigmoid_kernel, compute_dtype=compute_dtype),
        out_shape=jax.ShapeDtypeStruct(x2.shape, dtype),
        grid=(pl.cdiv(rows, tile_rows),),
        in_specs=[pl.BlockSpec((tile_rows, _LANE), lambda i: (i, 0))],
        out_specs=pl.BlockSpec((tile_rows, _LANE), lambda i: (i, 0)),
        compiler_params=pltpu.CompilerParams(**cp_kwargs),
        cost_estimate=cost,
    )(x2)


def sigmoid_pallas(x: jax.Array) -> jax.Array:
    if x.size == 0:
        return x  # nothing to do

    orig_shape = x.shape
    dtype = x.dtype
    total = int(x.size)

    target_block_bytes, vmem_limit_bytes, multi_core, native_bf16 = _tpu_config()

    # bf16 stays native on chips with bf16 VPU/EUP (v6e/v7x); f32 elsewhere.
    if dtype == jnp.bfloat16 and native_bf16:
        compute_dtype = jnp.bfloat16
    else:
        compute_dtype = jnp.float32

    flat = x.reshape(-1)
    main = (total // _LANE) * _LANE

    if main == total:
        # Common lane-dense case: view as (rows, 128) with zero padding/copies.
        y2 = _sigmoid_2d(flat.reshape(main // _LANE, _LANE), compute_dtype,
                         target_block_bytes, vmem_limit_bytes, multi_core)
        return y2.reshape(orig_shape)

    if main == 0:
        # Fewer than 128 elements: not worth a kernel launch at all.
        return jax.nn.sigmoid(flat.astype(compute_dtype)).astype(dtype).reshape(orig_shape)

    # Ragged size: kernel on the 128-aligned prefix, tiny (<128 elem) tail in XLA.
    head = _sigmoid_2d(flat[:main].reshape(main // _LANE, _LANE), compute_dtype,
                       target_block_bytes, vmem_limit_bytes, multi_core).reshape(-1)
    tail = jax.nn.sigmoid(flat[main:].astype(compute_dtype)).astype(dtype)
    return jnp.concatenate([head, tail]).reshape(orig_shape)


if __name__ == "__main__":
    key = jax.random.PRNGKey(0)
    # Small NCHW input consistent with a typical conv-activation usage.
    x = jax.random.normal(key, (2, 4, 16, 16), dtype=jnp.float32)

    y = sigmoid_pallas(x)
    jax.block_until_ready(y)

    y_ref = jax.nn.sigmoid(x)
    assert y.shape == x.shape and y.dtype == x.dtype
    assert jnp.allclose(y, y_ref, atol=1e-5, rtol=1e-5), "mismatch vs reference sigmoid"

    # Also exercise a ragged (non-128-divisible) size through the prefix+tail path.
    x2 = jax.random.normal(jax.random.PRNGKey(1), (3, 5, 7), dtype=jnp.float32)
    y2 = sigmoid_pallas(x2)
    jax.block_until_ready(y2)
    assert jnp.allclose(y2, jax.nn.sigmoid(x2), atol=1e-5, rtol=1e-5)

    print("KERNEL_OK")
</pallas_src>

<mosaic_0001>
module attributes {stable_mosaic.version = 11 : i64} {
  func.func @_sigmoid_kernel(%arg0: i32, %arg1: memref<16x128xf32, #tpu.memory_space<vmem>>, %arg2: memref<16x128xf32, #tpu.memory_space<vmem>>) attributes {dimension_semantics = [#tpu.dimension_semantics<arbitrary>], iteration_bounds = array<i64: 1>, scalar_prefetch = 0 : i64, scratch_operands = 0 : i64, tpu.core_type = #tpu.core_type<tc>, window_params = [{transform_indices = @transform_0, window_bounds = array<i64: 16, 128>}, {transform_indices = @transform_1, window_bounds = array<i64: 16, 128>}]} {
    %c0 = arith.constant 0 : index
    %c0_0 = arith.constant 0 : index
    %0 = vector.load %arg1[%c0, %c0_0] : memref<16x128xf32, #tpu.memory_space<vmem>>, vector<16x128xf32>
    %cst = arith.constant 5.000000e-01 : f32
    %1 = vector.broadcast %cst : f32 to vector<16x128xf32>
    %2 = arith.mulf %1, %0 : vector<16x128xf32>
    %3 = math.tanh %2 : vector<16x128xf32>
    %cst_1 = arith.constant 5.000000e-01 : f32
    %4 = vector.broadcast %cst_1 : f32 to vector<16x128xf32>
    %5 = arith.mulf %4, %3 : vector<16x128xf32>
    %cst_2 = arith.constant 5.000000e-01 : f32
    %6 = vector.broadcast %cst_2 : f32 to vector<16x128xf32>
    %7 = arith.addf %5, %6 : vector<16x128xf32>
    %c0_3 = arith.constant 0 : index
    %c0_4 = arith.constant 0 : index
    %8 = vector.load %arg2[%c0_3, %c0_4] : memref<16x128xf32, #tpu.memory_space<vmem>>, vector<16x128xf32>
    tpu.vector_store %arg2[%c0_3, %c0_4], %7 {strides = array<i32>} : memref<16x128xf32, #tpu.memory_space<vmem>>, vector<16x128xf32>,
    return
  }
  func.func @transform_0(%arg0: i32) -> (i32, i32) {
    %c0_i32 = arith.constant 0 : i32
    %c0_i32_0 = arith.constant 0 : i32
    return %arg0, %c0_i32 : i32, i32
  }
  func.func @transform_1(%arg0: i32) -> (i32, i32) {
    %c0_i32 = arith.constant 0 : i32
    %c0_i32_0 = arith.constant 0 : i32
    return %arg0, %c0_i32 : i32, i32
  }
}

</mosaic_0001>

<bundles_post_ra>
// kernel: tpu_custom_call.1
= control target key start
LH: loop header
LB: loop body
LE: loop exit
PB: predicated region body
PF: predicated region fallthrough
CT: control target
= control target key end

     0   :  { %6 = vsyncpa [#allocation3], 0  ;;  %s130_s0 = inlined_call_operand.hbm [shape: f32[16,128], index: 0, kind: input, shape index: {}]   ;;  %s131_s1 = inlined_call_operand.hbm [shape: f32[16,128], index: 1, kind: output, shape index: {}]  }
   0x1   :  { %7 = vsyncpa [#allocation4], 0  ;;  %s104_s6 = smov [#allocation2]  }
   0x2   :  { %s13_s7 = sshll.u32 %s104_s6, 4  ;;  %s14_s7 = int_to_ptr.vmem [resolvable:$true] %s13_s7 }
   0x3   :  { %s68_s8 = scalar_lea.vmem %s14_s7, 256  ;;  %p73_p1 = scmp.lt.s32.totalorder %s14_s7, %s14_s7 }
   0x4   :  { %p69_p0 = scmp.ne.s32.totalorder %s14_s7, %s68_s8  ;;  %p74_p2 = scmp.lt.s32.totalorder %s68_s8, %s68_s8 }
   0x6   :  { %p75_p3 = por %p74_p2, %p73_p1 }
   0x8   :  { %p76_p4 = pnand %p75_p3, %p69_p0 }
   0xa   :  { %79 = shalt.err (!%p76_p4)
}
   0xb   :  { %s105_s9 = smov 128   ;;  %s106_s10 = smov 8  }
   0xc   :  { %19 = dma.hbm_to_vmem [thread:$0]  %s130_s0, 256, %s14_s7, [#allocation3], %s105_s9, %s105_s9, %s106_s10  }
   0xd   :  { %100 = dma.done.wait [#allocation3], 256  }
   0xe   :  { %101 = vsyncadd [#allocation3], 4294967040  ;;  %v23_v0 = vld [vmem:[#allocation2] sm:$0xff]  ;;  %v24_v1 = vld [vmem:[#allocation2 + $0x8] sm:$0xff]  ;;  %s107_s13 = smov [#allocation5]  }
   0xf   :  { %v25_v2 = vmul.f32 0.5, %v23_v0  ;;  %v26_v3 = vmul.f32 0.5, %v24_v1  ;;  %s40_s14 = sshll.u32 %s107_s13, 4  ;;  %s41_s14 = int_to_ptr.vmem [resolvable:$true] %s40_s14 }
  0x10   :  { %s80_s0 = scalar_lea.vmem %s41_s14, 256  ;;  %p85_p6 = scmp.lt.s32.totalorder %s41_s14, %s41_s14 }
  0x11   :  { %56 = vtanh.f32 %v25_v2  ;;  %p81_p5 = scmp.ne.s32.totalorder %s41_s14, %s80_s0  ;;  %p86_p7 = scmp.lt.s32.totalorder %s80_s0, %s80_s0 }
  0x12   :  { %58 = vtanh.f32 %v26_v3 }
  0x13   :  { %p87_p8 = por %p86_p7, %p85_p6 }
  0x15   :  { %p88_p9 = pnand %p87_p8, %p81_p5 }
  0x1e   :  { %v57_v4 = vpop.eup %56 }
  0x1f   :  { %v59_v5 = vpop.eup %58  ;;  %v29_v6 = vmul.f32 0.5, %v57_v4 }
  0x20   :  { %v30_v7 = vmul.f32 0.5, %v59_v5 }
  0x21   :  { %v31_v8 = vadd.f32 0.5, %v29_v6 }
  0x22   :  { %v32_v9 = vadd.f32 0.5, %v30_v7 }
  0x23   :  { %33 = vst [vmem:[#allocation5] sm:$0xff] %v31_v8 }
  0x24   :  { %34 = vst [vmem:[#allocation5 + $0x8] sm:$0xff] %v32_v9 }
  0x25   :  { %91 = shalt.err (!%p88_p9)
}
  0x26   :  { %46 = dma.vmem_to_hbm [thread:$0]  %s41_s14, 256, %s131_s1, [#allocation4], %s105_s9, %s105_s9, %s106_s10  }
  0x27   :  { %102 = dma.done.wait [#allocation4], 256  }
  0x28   :  { %103 = vsyncadd [#allocation4], 4294967040 }
  0x29   :  { %50 = vsyncpa [#allocation3], 1 }
  0x2a   :  { %51 = vsyncpa [#allocation4], 1 }

</bundles_post_ra>
